<compile_context>
chip_gen: v7x
topology: tpu7x:2x2x1
jax: 0.10.0
libtpu: 0.0.40
codegen_flags: <defaults>
</compile_context>

<pallas_src>
import functools
import numpy as np
import jax
import jax.numpy as jnp
from jax.experimental import pallas as pl
from jax.experimental.pallas import tpu as pltpu


# --------------------------------------------------------------------------
# Pallas kernels
# --------------------------------------------------------------------------

def _residual_add_kernel(fx_ref, x_ref, o_ref):
    """o = fn(x) + x  (elementwise, one pass, no scratch)."""
    o_ref[...] = fx_ref[...] + x_ref[...]


def _linear_residual_kernel(xk_ref, w_ref, b_ref, res_ref, o_ref):
    """Fused ResidualAdd(Linear):  o = x @ W + b + x.

    xk_ref : (tm, tk)   K-tile of the matmul LHS
    w_ref  : (tk, D)    K-tile of the weights
    b_ref  : (1, D)     bias
    res_ref: (tm, D)    residual (block index constant across K -> fetched once)
    o_ref  : (tm, D)    f32 output, block index constant across K -> VMEM
                        resident; we accumulate directly into it (no scratch).
    """
    k = pl.program_id(1)

    @pl.when(k == 0)
    def _():
        # Residual + bias folded into the accumulator init: no separate
        # epilogue copy, no extra HBM pass for the residual add.
        o_ref[...] = res_ref[...] + b_ref[...]

    o_ref[...] += jnp.dot(xk_ref[...], w_ref[...],
                          preferred_element_type=jnp.float32)


# --------------------------------------------------------------------------
# Wrappers
# --------------------------------------------------------------------------

def _pick_row_tile(m, candidates=(1024, 512, 256, 128, 64, 32, 16, 8)):
    """Largest multiple-of-8 divisor of m from candidates, else full m."""
    for c in candidates:
        if c <= m and m % c == 0:
            return c
    return m


def residual_add(fx, x):
    """Pallas elementwise residual add: returns fx + x (same shape/dtype)."""
    assert fx.shape == x.shape, (fx.shape, x.shape)
    orig_shape = x.shape
    n = orig_shape[-1]
    m = int(np.prod(orig_shape[:-1])) if len(orig_shape) > 1 else 1
    fx2 = fx.reshape(m, n)
    x2 = x.reshape(m, n)

    tm = _pick_row_tile(m)
    grid = (m // tm,)
    spec = pl.BlockSpec((tm, n), lambda i: (i, 0))   # full feature dim on lanes

    out = pl.pallas_call(
        _residual_add_kernel,
        out_shape=jax.ShapeDtypeStruct((m, n), x.dtype),
        grid=grid,
        in_specs=[spec, spec],
        out_specs=spec,
        compiler_params=pltpu.CompilerParams(
            dimension_semantics=("parallel",)),
    )(fx2, x2)
    return out.reshape(orig_shape)


class ResidualAdd:
    """Faithful translation of the PyTorch module: x -> fn(x, **kwargs) + x.

    `fn` is an arbitrary callable, so in the generic case it runs as plain JAX
    outside the kernel; only the residual add is a Pallas kernel.  Use
    `linear_residual_add` when fn is a Linear to fuse everything in one kernel.
    """

    def __init__(self, fn):
        self.fn = fn

    def __call__(self, x, **kwargs):
        fx = self.fn(x, **kwargs)
        return residual_add(fx, x)


def linear_residual_add(x, w, b, *, tm=256, tk=512):
    """Fused ResidualAdd(Linear):  x @ w + b + x  in a single pallas_call.

    x: (M, D) f32, w: (D, D) f32, b: (D,) f32.  Residual requires square W.
    """
    m, d = x.shape
    assert w.shape == (d, d), "residual add requires fn to preserve the shape"
    x = x.astype(jnp.float32)
    w = w.astype(jnp.float32)
    b2 = b.reshape(1, d).astype(jnp.float32)

    tm = _pick_row_tile(m, (tm, 256, 128, 64, 32, 16, 8))
    # K tile: multiple of 128 that divides D, else take the whole K in one step.
    tk = next((c for c in (tk, 2048, 1024, 512, 256, 128)
               if c <= d and d % c == 0 and c % 128 == 0), d)
    grid = (m // tm, d // tk)   # reduction (K) axis last

    out = pl.pallas_call(
        _linear_residual_kernel,
        out_shape=jax.ShapeDtypeStruct((m, d), jnp.float32),
        grid=grid,
        in_specs=[
            pl.BlockSpec((tm, tk), lambda i, k: (i, k)),   # LHS K-tiles
            pl.BlockSpec((tk, d), lambda i, k: (k, 0)),    # weight K-tiles
            pl.BlockSpec((1, d), lambda i, k: (0, 0)),     # bias
            pl.BlockSpec((tm, d), lambda i, k: (i, 0)),    # residual (K-invariant)
        ],
        out_specs=pl.BlockSpec((tm, d), lambda i, k: (i, 0)),
        compiler_params=pltpu.CompilerParams(
            dimension_semantics=("parallel", "arbitrary")),
    )(x, w, b2, x)
    return out


# --------------------------------------------------------------------------

if __name__ == "__main__":
    key = jax.random.PRNGKey(0)
    k1, k2, k3 = jax.random.split(key, 3)

    # Small shapes consistent with the module: batch=2, seq=8, hidden=256
    # (hidden kept a multiple of 128 so output stores are lane-dense).
    B, S, D = 2, 8, 256
    x = jax.random.normal(k1, (B, S, D), jnp.float32)

    # (1) Generic ResidualAdd wrapping an arbitrary fn (here: GELU).
    #     fn runs as plain JAX; the residual add is the Pallas kernel.
    block = ResidualAdd(jax.nn.gelu)
    y = jax.block_until_ready(block(x))
    y_ref = jax.nn.gelu(x) + x
    assert y.shape == x.shape, y.shape
    assert bool(jnp.allclose(y, y_ref, atol=1e-5, rtol=1e-5))
    assert bool(jnp.all(jnp.isfinite(y)))

    # (2) Fused ResidualAdd(Linear): fn + residual in ONE kernel (no extra
    #     HBM pass for the residual, accumulation directly into o_ref).
    w = jax.random.normal(k2, (D, D), jnp.float32) / np.sqrt(D)
    b = 0.01 * jax.random.normal(k3, (D,), jnp.float32)
    x2 = x.reshape(B * S, D)
    y2 = jax.block_until_ready(linear_residual_add(x2, w, b))
    y2_ref = x2 @ w + b + x2
    assert y2.shape == (B * S, D), y2.shape
    assert bool(jnp.allclose(y2, y2_ref, atol=1e-4, rtol=1e-4))
    assert bool(jnp.all(jnp.isfinite(y2)))

    print("KERNEL_OK")
</pallas_src>

<mosaic_0001>
module attributes {stable_mosaic.version = 11 : i64} {
  func.func @_residual_add_kernel(%arg0: i32, %arg1: memref<16x256xf32, #tpu.memory_space<vmem>>, %arg2: memref<16x256xf32, #tpu.memory_space<vmem>>, %arg3: memref<16x256xf32, #tpu.memory_space<vmem>>) attributes {dimension_semantics = [#tpu.dimension_semantics<parallel>], iteration_bounds = array<i64: 1>, scalar_prefetch = 0 : i64, scratch_operands = 0 : i64, tpu.core_type = #tpu.core_type<tc>, window_params = [{transform_indices = @transform_0, window_bounds = array<i64: 16, 256>}, {transform_indices = @transform_1, window_bounds = array<i64: 16, 256>}, {transform_indices = @transform_2, window_bounds = array<i64: 16, 256>}]} {
    %c0 = arith.constant 0 : index
    %c0_0 = arith.constant 0 : index
    %0 = vector.load %arg1[%c0, %c0_0] : memref<16x256xf32, #tpu.memory_space<vmem>>, vector<16x256xf32>
    %c0_1 = arith.constant 0 : index
    %c0_2 = arith.constant 0 : index
    %1 = vector.load %arg2[%c0_1, %c0_2] : memref<16x256xf32, #tpu.memory_space<vmem>>, vector<16x256xf32>
    %2 = arith.addf %0, %1 : vector<16x256xf32>
    %c0_3 = arith.constant 0 : index
    %c0_4 = arith.constant 0 : index
    %3 = vector.load %arg3[%c0_3, %c0_4] : memref<16x256xf32, #tpu.memory_space<vmem>>, vector<16x256xf32>
    tpu.vector_store %arg3[%c0_3, %c0_4], %2 {strides = array<i32>} : memref<16x256xf32, #tpu.memory_space<vmem>>, vector<16x256xf32>,
    return
  }
  func.func @transform_0(%arg0: i32) -> (i32, i32) {
    %c0_i32 = arith.constant 0 : i32
    %c0_i32_0 = arith.constant 0 : i32
    return %arg0, %c0_i32 : i32, i32
  }
  func.func @transform_1(%arg0: i32) -> (i32, i32) {
    %c0_i32 = arith.constant 0 : i32
    %c0_i32_0 = arith.constant 0 : i32
    return %arg0, %c0_i32 : i32, i32
  }
  func.func @transform_2(%arg0: i32) -> (i32, i32) {
    %c0_i32 = arith.constant 0 : i32
    %c0_i32_0 = arith.constant 0 : i32
    return %arg0, %c0_i32 : i32, i32
  }
}

</mosaic_0001>

<bundles_post_ra>
// kernel: tpu_custom_call.1
= control target key start
LH: loop header
LB: loop body
LE: loop exit
PB: predicated region body
PF: predicated region fallthrough
CT: control target
= control target key end

     0   :  { %7 = vsyncpa [#allocation3], 0  ;;  %s216_s0 = inlined_call_operand.hbm [shape: f32[16,256], index: 0, kind: input, shape index: {}]   ;;  %s217_s1 = inlined_call_operand.hbm [shape: f32[16,256], index: 1, kind: input, shape index: {}]   ;;  %s218_s2 = inlined_call_operand.hbm [shape: f32[16,256], index: 2, kind: output, shape index: {}]  }
   0x1   :  { %8 = vsyncpa [#allocation6], 0 }
   0x2   :  { %9 = vsyncpa [#allocation4], 0  ;;  %s151_s9 = smov [#allocation2]   ;;  %s79_s13 = scalar_lea.hbm %s216_s0, 512 }
   0x3   :  { %s15_s10 = sshll.u32 %s151_s9, 4  ;;  %p80_p0 = scmp.ne.s32.totalorder %s216_s0, %s79_s13  ;;  %s16_s10 = int_to_ptr.vmem [resolvable:$true] %s15_s10 }
   0x4   :  { %p83_p1 = scmp.lt.u32.totalorder %s79_s13, %s216_s0 }
   0x6   :  { %p85_p2 = pnand %p83_p1, %p80_p0 }
   0x8   :  { %88 = shalt.err (!%p85_p2)
}
   0x9   :  { %s89_s18 = scalar_lea.vmem %s16_s10, 512  ;;  %p94_p4 = scmp.lt.s32.totalorder %s16_s10, %s16_s10 }
   0xa   :  { %p90_p3 = scmp.ne.s32.totalorder %s16_s10, %s89_s18  ;;  %p95_p5 = scmp.lt.s32.totalorder %s89_s18, %s89_s18 }
   0xc   :  { %p96_p6 = por %p95_p5, %p94_p4 }
   0xe   :  { %p97_p7 = pnand %p96_p6, %p90_p3 }
  0x10   :  { %100 = shalt.err (!%p97_p7)
}
  0x11   :  { %s152_s19 = smov 256   ;;  %s153_s20 = smov 16  }
  0x12   :  { %21 = dma.hbm_to_vmem [thread:$0]  %s216_s0, 512, %s16_s10, [#allocation3], %s152_s19, %s152_s19, %s153_s20  }
  0x13   :  { %s154_s23 = smov [#allocation5]   ;;  %s101_s27 = scalar_lea.hbm %s217_s1, 512 }
  0x14   :  { %s27_s24 = sshll.u32 %s154_s23, 4  ;;  %p102_p8 = scmp.ne.s32.totalorder %s217_s1, %s101_s27  ;;  %s28_s24 = int_to_ptr.vmem [resolvable:$true] %s27_s24 }
  0x15   :  { %p105_p9 = scmp.lt.u32.totalorder %s101_s27, %s217_s1 }
  0x17   :  { %p107_p10 = pnand %p105_p9, %p102_p8 }
  0x19   :  { %110 = shalt.err (!%p107_p10)
}
  0x1a   :  { %s111_s4 = scalar_lea.vmem %s28_s24, 512  ;;  %p116_p12 = scmp.lt.s32.totalorder %s28_s24, %s28_s24 }
  0x1b   :  { %p112_p11 = scmp.ne.s32.totalorder %s28_s24, %s111_s4  ;;  %p117_p13 = scmp.lt.s32.totalorder %s111_s4, %s111_s4 }
  0x1d   :  { %p118_p0 = por %p117_p13, %p116_p12 }
  0x1f   :  { %p119_p1 = pnand %p118_p0, %p112_p11 }
  0x21   :  { %122 = shalt.err (!%p119_p1)
}
  0x22   :  { %33 = dma.hbm_to_vmem [thread:$0]  %s217_s1, 512, %s28_s24, [#allocation6], %s152_s19, %s152_s19, %s153_s20  }
  0x23   :  { %145 = dma.done.wait [#allocation3], 512  }
  0x24   :  { %146 = vsyncadd [#allocation3], 4294966784 }
  0x25   :  { %147 = dma.done.wait [#allocation6], 512  }
  0x26   :  { %148 = vsyncadd [#allocation6], 4294966784  ;;  %v40_v0 = vld [vmem:[#allocation2] sm:$0xff]  ;;  %v41_v2 = vld [vmem:[#allocation2 + $0x8] sm:$0xff]  ;;  %s155_s6 = smov [#allocation7]  }
  0x27   :  { %v44_v1 = vld [vmem:[#allocation5] sm:$0xff]  ;;  %s61_s7 = sshll.u32 %s155_s6, 4  ;;  %v45_v4 = vld [vmem:[#allocation5 + $0x8] sm:$0xff]  ;;  %v42_v5 = vld [vmem:[#allocation2 + $0x10] sm:$0xff]  ;;  %s62_s7 = int_to_ptr.vmem [resolvable:$true] %s61_s7 }
  0x28   :  { %v48_v3 = vadd.f32 %v44_v1, %v40_v0  ;;  %v46_v6 = vld [vmem:[#allocation5 + $0x10] sm:$0xff]  ;;  %v49_v7 = vadd.f32 %v45_v4, %v41_v2  ;;  %v43_v9 = vld [vmem:[#allocation2 + $0x18] sm:$0xff]  ;;  %s123_s1 = scalar_lea.vmem %s62_s7, 512  ;;  %p128_p3 = scmp.lt.s32.totalorder %s62_s7, %s62_s7 }
  0x29   :  { %v50_v8 = vadd.f32 %v46_v6, %v42_v5  ;;  %v47_v10 = vld [vmem:[#allocation5 + $0x18] sm:$0xff]  ;;  %p124_p2 = scmp.ne.s32.totalorder %s62_s7, %s123_s1  ;;  %p129_p4 = scmp.lt.s32.totalorder %s123_s1, %s123_s1 }
  0x2a   :  { %52 = vst [vmem:[#allocation7] sm:$0xff] %v48_v3  ;;  %v51_v11 = vadd.f32 %v47_v10, %v43_v9  ;;  %53 = vst [vmem:[#allocation7 + $0x8] sm:$0xff] %v49_v7 }
  0x2b   :  { %54 = vst [vmem:[#allocation7 + $0x10] sm:$0xff] %v50_v8  ;;  %p130_p5 = por %p129_p4, %p128_p3 }
  0x2c   :  { %55 = vst [vmem:[#allocation7 + $0x18] sm:$0xff] %v51_v11 }
  0x2d   :  { %p131_p6 = pnand %p130_p5, %p124_p2 }
  0x2f   :  { %134 = shalt.err (!%p131_p6)
}
  0x30   :  { %s135_s10 = scalar_lea.hbm %s218_s2, 512 }
  0x31   :  { %p136_p7 = scmp.ne.s32.totalorder %s218_s2, %s135_s10  ;;  %p139_p8 = scmp.lt.u32.totalorder %s135_s10, %s218_s2 }
  0x33   :  { %p141_p9 = pnand %p139_p8, %p136_p7 }
  0x35   :  { %144 = shalt.err (!%p141_p9)
}
  0x36   :  { %67 = dma.vmem_to_hbm [thread:$0]  %s62_s7, 512, %s218_s2, [#allocation4], %s152_s19, %s152_s19, %s153_s20  }
  0x37   :  { %149 = dma.done.wait [#allocation4], 512  }
  0x38   :  { %150 = vsyncadd [#allocation4], 4294966784 }
  0x39   :  { %71 = vsyncpa [#allocation3], 1 }
  0x3a   :  { %72 = vsyncpa [#allocation6], 1 }
  0x3b   :  { %73 = vsyncpa [#allocation4], 1 }

</bundles_post_ra>
